<compile_context>
chip_gen: v6e
topology: v6e:2x2x1
jax: 0.10.0
libtpu: 0.0.40
codegen_flags: <defaults>
</compile_context>

<pallas_src>
import jax
import jax.numpy as jnp
from jax.experimental import pallas as pl
from jax.experimental.pallas import tpu as pltpu

EPS = 1e-5


def domain_classifier_kernel(x_ref, w1_ref, w2_ref, p_ref, out_ref):
    # Packed small-parameter block: one (8,128) f32 tile, sliced by row.
    p = p_ref[...]
    g1, be1 = p[0:1, :], p[1:2, :]
    g2, be2 = p[2:3, :], p[3:4, :]
    w3 = p[4:5, :]          # fc3 weight as a (1,128) row (cols 64..127 are zero pads)
    b3 = p[5:6, 0:1]        # fc3 bias as (1,1)

    x = x_ref[...]
    inv_b = 1.0 / x.shape[0]

    # ---- fc1: Linear(256 -> 128) (bias cancelled by training-mode BN) + BN1 + ReLU ----
    h = jnp.dot(x.astype(w1_ref.dtype), w1_ref[...],
                preferred_element_type=jnp.float32)
    mean = jnp.sum(h, axis=0, keepdims=True) * inv_b
    d = h - mean
    var = jnp.sum(d * d, axis=0, keepdims=True) * inv_b          # centered, biased var
    h = jnp.maximum(d * (g1 * jax.lax.rsqrt(var + EPS)) + be1, 0.0)

    # ---- fc2: Linear(128 -> 64, zero-padded to 128 lanes) + BN2 + ReLU ----
    h = jnp.dot(h.astype(w2_ref.dtype), w2_ref[...],
                preferred_element_type=jnp.float32)
    mean = jnp.sum(h, axis=0, keepdims=True) * inv_b
    d = h - mean
    var = jnp.sum(d * d, axis=0, keepdims=True) * inv_b
    h = jnp.maximum(d * (g2 * jax.lax.rsqrt(var + EPS)) + be2, 0.0)  # pads stay exactly 0

    # ---- fc3: Linear(64 -> 1) as VPU multiply + lane reduction (no N=1 MXU dot) ----
    out = jnp.sum(h * w3, axis=-1, keepdims=True) + b3
    # out.view(out.shape[0], -1) is a no-op reshape: already (B, 1)
    out_ref[...] = out.astype(out_ref.dtype)


def domain_classifier(x, params, *, weights_dtype=jnp.bfloat16):
    """x: (B, 256) float32. params: dict of f32 weights. Returns (B, 1) float32."""
    B = x.shape[0]
    H2, H2P = 64, 128
    pad = H2P - H2

    # Weight prep (layout plumbing, outside the kernel): bf16 by default, 64->128 pad.
    w1 = params["w1"].astype(weights_dtype)                              # (256, 128)
    w2 = jnp.pad(params["w2"], ((0, 0), (0, pad))).astype(weights_dtype)  # (128, 128)

    # Pack the six tiny vectors into a single (8, 128) f32 block: one DMA, one VMEM tile.
    # Padded columns of g2/be2/w3 are zero so padded lanes stay exactly 0 in the kernel.
    pblock = jnp.zeros((8, H2P), jnp.float32)
    pblock = pblock.at[0, :].set(params["g1"][0])
    pblock = pblock.at[1, :].set(params["be1"][0])
    pblock = pblock.at[2, :H2].set(params["g2"][0])
    pblock = pblock.at[3, :H2].set(params["be2"][0])
    pblock = pblock.at[4, :H2].set(params["w3"][:, 0])
    pblock = pblock.at[5, 0].set(params["b3"][0, 0])

    vmem = pl.BlockSpec(memory_space=pltpu.MemorySpace.VMEM)
    return pl.pallas_call(
        domain_classifier_kernel,
        out_shape=jax.ShapeDtypeStruct((B, 1), jnp.float32),
        in_specs=[vmem, vmem, vmem, vmem],
        out_specs=vmem,
    )(x, w1, w2, pblock)


def init_params(key):
    """Deterministic synthetic parameters with the shapes nn.Linear/nn.BatchNorm1d imply."""
    ks = jax.random.split(key, 6)

    def linear(kw, kb, fan_in, fan_out):
        bound = 1.0 / jnp.sqrt(fan_in)
        # Stored as (in, out) so the kernel/reference use x @ W.
        w = jax.random.uniform(kw, (fan_in, fan_out), jnp.float32, -bound, bound)
        b = jax.random.uniform(kb, (1, fan_out), jnp.float32, -bound, bound)
        return w, b

    w1, b1 = linear(ks[0], ks[1], 256, 128)
    w2, b2 = linear(ks[2], ks[3], 128, 64)
    w3, b3 = linear(ks[4], ks[5], 64, 1)
    return {
        "w1": w1, "b1": b1,
        "g1": jnp.ones((1, 128), jnp.float32), "be1": jnp.zeros((1, 128), jnp.float32),
        "w2": w2, "b2": b2,
        "g2": jnp.ones((1, 64), jnp.float32), "be2": jnp.zeros((1, 64), jnp.float32),
        "w3": w3, "b3": b3,
    }


def reference_f32(x, p):
    """Pure-JAX reference mirroring the PyTorch forward exactly (f32, biases included)."""
    h = x @ p["w1"] + p["b1"]
    m = h.mean(0, keepdims=True); v = ((h - m) ** 2).mean(0, keepdims=True)
    h = jnp.maximum((h - m) / jnp.sqrt(v + EPS) * p["g1"] + p["be1"], 0.0)
    h = h @ p["w2"] + p["b2"]
    m = h.mean(0, keepdims=True); v = ((h - m) ** 2).mean(0, keepdims=True)
    h = jnp.maximum((h - m) / jnp.sqrt(v + EPS) * p["g2"] + p["be2"], 0.0)
    return h @ p["w3"] + p["b3"]


def reference_matched(x, p, weights_dtype=jnp.bfloat16):
    """Reference mirroring the kernel's precision: bf16 MXU inputs, f32 accum + f32 BN."""
    w1 = p["w1"].astype(weights_dtype)
    w2 = p["w2"].astype(weights_dtype)
    h = jnp.dot(x.astype(weights_dtype), w1, preferred_element_type=jnp.float32) + p["b1"]
    m = h.mean(0, keepdims=True); v = ((h - m) ** 2).mean(0, keepdims=True)
    h = jnp.maximum((h - m) / jnp.sqrt(v + EPS) * p["g1"] + p["be1"], 0.0)
    h = jnp.dot(h.astype(weights_dtype), w2, preferred_element_type=jnp.float32) + p["b2"]
    m = h.mean(0, keepdims=True); v = ((h - m) ** 2).mean(0, keepdims=True)
    h = jnp.maximum((h - m) / jnp.sqrt(v + EPS) * p["g2"] + p["be2"], 0.0)
    return h @ p["w3"] + p["b3"]


if __name__ == "__main__":
    key = jax.random.PRNGKey(0)
    kx, kp = jax.random.split(key)

    B = 8  # batch (>1 required for training-mode BatchNorm1d semantics)
    x = jax.random.normal(kx, (B, 256), jnp.float32)
    params = init_params(kp)

    ref32 = reference_f32(x, params)

    # 1) f32-weights path: exact module semantics.
    out_f32 = jax.block_until_ready(domain_classifier(x, params, weights_dtype=jnp.float32))
    assert out_f32.shape == (B, 1)
    assert jnp.allclose(out_f32, ref32, atol=1e-4, rtol=1e-4), "f32 path mismatch vs reference"

    # 2) bf16-weights path (perf default): strict check vs matched-precision reference,
    #    plus a loose sanity bound on the bf16 weight-quantization error vs full f32.
    out_bf16 = jax.block_until_ready(domain_classifier(x, params))
    assert out_bf16.shape == (B, 1)
    ref_m = reference_matched(x, params)
    assert jnp.allclose(out_bf16, ref_m, atol=1e-3, rtol=1e-3), "bf16 path mismatch vs matched ref"
    assert jnp.allclose(out_bf16, ref32, atol=1e-1, rtol=1e-1), "bf16 quantization error too large"

    print("KERNEL_OK")
</pallas_src>

<mosaic_0001>
module attributes {stable_mosaic.version = 11 : i64} {
  func.func @domain_classifier_kernel(%arg0: memref<8x256xf32, #tpu.memory_space<vmem>>, %arg1: memref<256x128xf32, #tpu.memory_space<vmem>>, %arg2: memref<128x128xf32, #tpu.memory_space<vmem>>, %arg3: memref<8x128xf32, #tpu.memory_space<vmem>>, %arg4: memref<8x1xf32, #tpu.memory_space<vmem>>) attributes {dimension_semantics = [], scalar_prefetch = 0 : i64, scratch_operands = 0 : i64, tpu.core_type = #tpu.core_type<tc>} {
    %c0 = arith.constant 0 : index
    %c0_0 = arith.constant 0 : index
    %0 = vector.load %arg3[%c0, %c0_0] : memref<8x128xf32, #tpu.memory_space<vmem>>, vector<8x128xf32>
    %1 = vector.extract_strided_slice %0 {offsets = [0, 0], sizes = [1, 128], strides = [1, 1]} : vector<8x128xf32> to vector<1x128xf32>
    %2 = vector.extract_strided_slice %0 {offsets = [1, 0], sizes = [1, 128], strides = [1, 1]} : vector<8x128xf32> to vector<1x128xf32>
    %3 = vector.extract_strided_slice %0 {offsets = [2, 0], sizes = [1, 128], strides = [1, 1]} : vector<8x128xf32> to vector<1x128xf32>
    %4 = vector.extract_strided_slice %0 {offsets = [3, 0], sizes = [1, 128], strides = [1, 1]} : vector<8x128xf32> to vector<1x128xf32>
    %5 = vector.extract_strided_slice %0 {offsets = [4, 0], sizes = [1, 128], strides = [1, 1]} : vector<8x128xf32> to vector<1x128xf32>
    %6 = vector.extract_strided_slice %0 {offsets = [5, 0], sizes = [1, 1], strides = [1, 1]} : vector<8x128xf32> to vector<1x1xf32>
    %c0_1 = arith.constant 0 : index
    %c0_2 = arith.constant 0 : index
    %7 = vector.load %arg0[%c0_1, %c0_2] : memref<8x256xf32, #tpu.memory_space<vmem>>, vector<8x256xf32>
    %c0_3 = arith.constant 0 : index
    %c0_4 = arith.constant 0 : index
    %8 = vector.load %arg1[%c0_3, %c0_4] : memref<256x128xf32, #tpu.memory_space<vmem>>, vector<256x128xf32>
    %cst = arith.constant dense<0.000000e+00> : vector<8x128xf32>
    %9 = tpu.matmul %7, %8, %cst {dimension_numbers = #tpu.dot_dimension_numbers<[1], [0], [0], [1], [0, 0, 1, 1], [], []>} : vector<8x256xf32>, vector<256x128xf32>, vector<8x128xf32> -> vector<8x128xf32>
    %cst_5 = arith.constant dense<0.000000e+00> : vector<128xf32>
    %10 = vector.multi_reduction <add>, %9, %cst_5 [0] : vector<8x128xf32> to vector<128xf32>
    %11 = vector.shape_cast %10 : vector<128xf32> to vector<1x128xf32>
    %cst_6 = arith.constant 1.250000e-01 : f32
    %12 = vector.broadcast %cst_6 : f32 to vector<1x128xf32>
    %13 = arith.mulf %11, %12 : vector<1x128xf32>
    %14 = vector.broadcast %13 : vector<1x128xf32> to vector<8x128xf32>
    %15 = arith.subf %9, %14 : vector<8x128xf32>
    %16 = arith.mulf %15, %15 : vector<8x128xf32>
    %cst_7 = arith.constant dense<0.000000e+00> : vector<128xf32>
    %17 = vector.multi_reduction <add>, %16, %cst_7 [0] : vector<8x128xf32> to vector<128xf32>
    %18 = vector.shape_cast %17 : vector<128xf32> to vector<1x128xf32>
    %cst_8 = arith.constant 1.250000e-01 : f32
    %19 = vector.broadcast %cst_8 : f32 to vector<1x128xf32>
    %20 = arith.mulf %18, %19 : vector<1x128xf32>
    %cst_9 = arith.constant 9.99999974E-6 : f32
    %21 = vector.broadcast %cst_9 : f32 to vector<1x128xf32>
    %22 = arith.addf %20, %21 : vector<1x128xf32>
    %23 = math.rsqrt %22 : vector<1x128xf32>
    %24 = arith.mulf %1, %23 : vector<1x128xf32>
    %25 = vector.broadcast %24 : vector<1x128xf32> to vector<8x128xf32>
    %26 = arith.mulf %15, %25 : vector<8x128xf32>
    %27 = vector.broadcast %2 : vector<1x128xf32> to vector<8x128xf32>
    %28 = arith.addf %26, %27 : vector<8x128xf32>
    %cst_10 = arith.constant 0.000000e+00 : f32
    %29 = vector.broadcast %cst_10 : f32 to vector<8x128xf32>
    %30 = arith.maximumf %28, %29 : vector<8x128xf32>
    %c0_11 = arith.constant 0 : index
    %c0_12 = arith.constant 0 : index
    %31 = vector.load %arg2[%c0_11, %c0_12] : memref<128x128xf32, #tpu.memory_space<vmem>>, vector<128x128xf32>
    %cst_13 = arith.constant dense<0.000000e+00> : vector<8x128xf32>
    %32 = tpu.matmul %30, %31, %cst_13 {dimension_numbers = #tpu.dot_dimension_numbers<[1], [0], [0], [1], [0, 0, 1, 1], [], []>} : vector<8x128xf32>, vector<128x128xf32>, vector<8x128xf32> -> vector<8x128xf32>
    %cst_14 = arith.constant dense<0.000000e+00> : vector<128xf32>
    %33 = vector.multi_reduction <add>, %32, %cst_14 [0] : vector<8x128xf32> to vector<128xf32>
    %34 = vector.shape_cast %33 : vector<128xf32> to vector<1x128xf32>
    %cst_15 = arith.constant 1.250000e-01 : f32
    %35 = vector.broadcast %cst_15 : f32 to vector<1x128xf32>
    %36 = arith.mulf %34, %35 : vector<1x128xf32>
    %37 = vector.broadcast %36 : vector<1x128xf32> to vector<8x128xf32>
    %38 = arith.subf %32, %37 : vector<8x128xf32>
    %39 = arith.mulf %38, %38 : vector<8x128xf32>
    %cst_16 = arith.constant dense<0.000000e+00> : vector<128xf32>
    %40 = vector.multi_reduction <add>, %39, %cst_16 [0] : vector<8x128xf32> to vector<128xf32>
    %41 = vector.shape_cast %40 : vector<128xf32> to vector<1x128xf32>
    %cst_17 = arith.constant 1.250000e-01 : f32
    %42 = vector.broadcast %cst_17 : f32 to vector<1x128xf32>
    %43 = arith.mulf %41, %42 : vector<1x128xf32>
    %cst_18 = arith.constant 9.99999974E-6 : f32
    %44 = vector.broadcast %cst_18 : f32 to vector<1x128xf32>
    %45 = arith.addf %43, %44 : vector<1x128xf32>
    %46 = math.rsqrt %45 : vector<1x128xf32>
    %47 = arith.mulf %3, %46 : vector<1x128xf32>
    %48 = vector.broadcast %47 : vector<1x128xf32> to vector<8x128xf32>
    %49 = arith.mulf %38, %48 : vector<8x128xf32>
    %50 = vector.broadcast %4 : vector<1x128xf32> to vector<8x128xf32>
    %51 = arith.addf %49, %50 : vector<8x128xf32>
    %cst_19 = arith.constant 0.000000e+00 : f32
    %52 = vector.broadcast %cst_19 : f32 to vector<8x128xf32>
    %53 = arith.maximumf %51, %52 : vector<8x128xf32>
    %54 = vector.broadcast %5 : vector<1x128xf32> to vector<8x128xf32>
    %55 = arith.mulf %53, %54 : vector<8x128xf32>
    %cst_20 = arith.constant dense<0.000000e+00> : vector<8xf32>
    %56 = vector.multi_reduction <add>, %55, %cst_20 [1] : vector<8x128xf32> to vector<8xf32>
    %57 = vector.shape_cast %56 : vector<8xf32> to vector<8x1xf32>
    %58 = vector.broadcast %6 : vector<1x1xf32> to vector<8x1xf32>
    %59 = arith.addf %57, %58 : vector<8x1xf32>
    %c0_21 = arith.constant 0 : index
    %c0_22 = arith.constant 0 : index
    %60 = vector.load %arg4[%c0_21, %c0_22] : memref<8x1xf32, #tpu.memory_space<vmem>>, vector<8x1xf32>
    tpu.vector_store %arg4[%c0_21, %c0_22], %59 {strides = array<i32>} : memref<8x1xf32, #tpu.memory_space<vmem>>, vector<8x1xf32>,
    return
  }
}

</mosaic_0001>

<bundles_post_ra>
// kernel: tpu_custom_call.1
= control target key start
LH: loop header
LB: loop body
LE: loop exit
PB: predicated region body
PF: predicated region fallthrough
CT: control target
= control target key end

     0   :  { %9 = vsyncpa [#allocation3], 0  ;;  %s573_s0 = inlined_call_operand.hbm [shape: f32[8,256], index: 0, kind: input, shape index: {}]   ;;  %s574_s1 = inlined_call_operand.hbm [shape: f32[256,128], index: 1, kind: input, shape index: {}]   ;;  %s575_s2 = inlined_call_operand.hbm [shape: f32[128,128], index: 2, kind: input, shape index: {}]   ;;  %s576_s3 = inlined_call_operand.hbm [shape: f32[8,128], index: 3, kind: input, shape index: {}]   ;;  %s577_s4 = inlined_call_operand.vmem [shape: f32[8,1], index: 4, kind: output, shape index: {}]  }
   0x1   :  { %10 = vsyncpa [#allocation5], 0 }
   0x2   :  { %11 = vsyncpa [#allocation8], 0  ;;  %s525_s15 = smov [#allocation4]  }
   0x3   :  { %s27_s16 = sshll.u32 %s525_s15, 4  ;;  %s28_s16 = int_to_ptr.vmem [resolvable:$true] %s27_s16 }
   0x4   :  { %s447_s17 = scalar_lea.vmem %s28_s16, 4096  ;;  %p452_p1 = scmp.lt.s32.totalorder %s28_s16, %s28_s16 }
   0x5   :  { %p448_p0 = scmp.ne.s32.totalorder %s28_s16, %s447_s17  ;;  %p453_p2 = scmp.lt.s32.totalorder %s447_s17, %s447_s17 }
   0x7   :  { %p454_p3 = por %p453_p2, %p452_p1 }
   0x9   :  { %p455_p4 = pnand %p454_p3, %p448_p0 }
   0xb   :  { %458 = shalt.err (!%p455_p4)
}
   0xc   :  { %s526_s18 = smov 128   ;;  %s527_s19 = smov 8  }
   0xd   :  { %33 = dma.hbm_to_vmem [thread:$0]  %s574_s1, 4096, %s28_s16, [#allocation5], %s526_s18, %s526_s18, %s527_s19  }
   0xe   :  { %s528_s22 = smov [#allocation2]   ;;  %s529_s24 = smov [#allocation6]  }
   0xf   :  { %s18_s23 = sshll.u32 %s528_s22, 4  ;;  %s39_s25 = sshll.u32 %s529_s24, 4  ;;  %s19_s23 = int_to_ptr.vmem [resolvable:$true] %s18_s23  ;;  %s40_s25 = int_to_ptr.vmem [resolvable:$true] %s39_s25 }
  0x10   :  { %s467_s26 = scalar_lea.vmem %s19_s23, 256  ;;  %p472_p6 = scmp.lt.s32.totalorder %s19_s23, %s19_s23 }
  0x11   :  { %p468_p5 = scmp.ne.s32.totalorder %s19_s23, %s467_s26  ;;  %p473_p7 = scmp.lt.s32.totalorder %s467_s26, %s467_s26 }
  0x13   :  { %p474_p8 = por %p473_p7, %p472_p6 }
  0x15   :  { %p475_p9 = pnand %p474_p8, %p468_p5 }
  0x17   :  { %478 = shalt.err (!%p475_p9)
}
  0x18   :  { %21 = dma.hbm_to_vmem [thread:$0]  %s573_s0, 256, %s19_s23, [#allocation3]  }
  0x19   :  { %s487_s29 = scalar_lea.vmem %s40_s25, 2048  ;;  %p492_p11 = scmp.lt.s32.totalorder %s40_s25, %s40_s25 }
  0x1a   :  { %p488_p10 = scmp.ne.s32.totalorder %s40_s25, %s487_s29  ;;  %p493_p12 = scmp.lt.s32.totalorder %s487_s29, %s487_s29 }
  0x1c   :  { %p494_p13 = por %p493_p12, %p492_p11 }
  0x1e   :  { %p495_p0 = pnand %p494_p13, %p488_p10 }
  0x20   :  { %498 = shalt.err (!%p495_p0)
}
  0x21   :  { %45 = dma.hbm_to_vmem [thread:$0]  %s575_s2, 2048, %s40_s25, [#allocation5], %s526_s18, %s526_s18, %s527_s19  }
  0x22   :  { %s530_s5 = smov [#allocation7]  }
  0x23   :  { %s52_s6 = sshll.u32 %s530_s5, 4  ;;  %s53_s6 = int_to_ptr.vmem [resolvable:$true] %s52_s6 }
  0x24   :  { %s507_s7 = scalar_lea.vmem %s53_s6, 128  ;;  %p512_p2 = scmp.lt.s32.totalorder %s53_s6, %s53_s6 }
  0x25   :  { %p508_p1 = scmp.ne.s32.totalorder %s53_s6, %s507_s7  ;;  %p513_p3 = scmp.lt.s32.totalorder %s507_s7, %s507_s7 }
  0x27   :  { %p514_p4 = por %p513_p3, %p512_p2 }
  0x29   :  { %p515_p5 = pnand %p514_p4, %p508_p1 }
  0x2b   :  { %518 = shalt.err (!%p515_p5)
}
  0x2c   :  { %55 = dma.hbm_to_vmem [thread:$0]  %s576_s3, 128, %s53_s6, [#allocation8]  }
  0x2d   :  { %519 = dma.done.wait [#allocation3], 256  }
  0x2e   :  { %520 = vsyncadd [#allocation3], 4294967040 }
  0x2f   :  { %521 = dma.done.wait [#allocation5], 6144  }
  0x30   :  { %522 = vsyncadd [#allocation5], 4294961152 }
  0x31   :  { %523 = dma.done.wait [#allocation8], 128  }
  0x32   :  { %524 = vsyncadd [#allocation8], 4294967168  ;;  %v102_v0 = vld [vmem:[#allocation4 + $0xf8] sm:$0xff]  ;;  %v101_v2 = vld [vmem:[#allocation4 + $0xf0] sm:$0xff]  ;;  %v531_v34 = vmov 0.0   ;;  %vm532_vm0 = vmmov 0  }
  0x33   :  { %v86_v1 = vld [vmem:[#allocation4 + $0x78] sm:$0xff]  ;;  %340 = vmatprep.subr.mxu0 %v102_v0  ;;  %v85_v3 = vld [vmem:[#allocation4 + $0x70] sm:$0xff]  ;;  %v100_v4 = vld [vmem:[#allocation4 + $0xe8] sm:$0xff]  ;;  %392 = vmatprep.subr.mxu1 %v531_v34  ;;  %vm331_vm1 = vcmask 7168  }
  0x34   :  { %341 = vmatpush3.msra.mxu0 %v86_v1  ;;  %v84_v5 = vld [vmem:[#allocation4 + $0x68] sm:$0xff]  ;;  %v99_v6 = vld [vmem:[#allocation4 + $0xe0] sm:$0xff]  ;;  %v98_v8 = vld [vmem:[#allocation4 + $0xd8] sm:$0xff]  ;;  %424 = vmatprep.mubr.msk.f32.mxu1 %vm532_vm0, %v531_v34 }
  0x35   :  { %342 = vmatprep.subr.mxu0 %v101_v2  ;;  %v83_v7 = vld [vmem:[#allocation4 + $0x60] sm:$0xff]  ;;  %v82_v9 = vld [vmem:[#allocation4 + $0x58] sm:$0xff]  ;;  %v97_v10 = vld [vmem:[#allocation4 + $0xd0] sm:$0xff] }
  0x36   :  { %343 = vmatpush3.msra.mxu0 %v85_v3  ;;  %v81_v11 = vld [vmem:[#allocation4 + $0x50] sm:$0xff]  ;;  %v96_v12 = vld [vmem:[#allocation4 + $0xc8] sm:$0xff]  ;;  %v70_v13 = vld [vmem:[#allocation2 + $0x8] sm:$0xff] }
  0x37   :  { %344 = vmatprep.subr.mxu0 %v100_v4  ;;  %v80_v14 = vld [vmem:[#allocation4 + $0x48] sm:$0xff]  ;;  %167 = vmatprep.mubr.f32.mxu0 %v70_v13  ;;  %v95_v15 = vld [vmem:[#allocation4 + $0xc0] sm:$0xff]  ;;  %v94_v17 = vld [vmem:[#allocation4 + $0xb8] sm:$0xff] }
  0x38   :  { %345 = vmatpush3.msra.mxu0 %v84_v5  ;;  %v79_v16 = vld [vmem:[#allocation4 + $0x40] sm:$0xff]  ;;  %v78_v18 = vld [vmem:[#allocation4 + $0x38] sm:$0xff]  ;;  %v93_v19 = vld [vmem:[#allocation4 + $0xb0] sm:$0xff] }
  0x39   :  { %346 = vmatprep.subr.mxu0 %v99_v6  ;;  %v77_v20 = vld [vmem:[#allocation4 + $0x30] sm:$0xff]  ;;  %v92_v21 = vld [vmem:[#allocation4 + $0xa8] sm:$0xff]  ;;  %v91_v23 = vld [vmem:[#allocation4 + $0xa0] sm:$0xff] }
  0x3a   :  { %347 = vmatpush3.msra.mxu0 %v83_v7  ;;  %v76_v22 = vld [vmem:[#allocation4 + $0x28] sm:$0xff]  ;;  %v75_v24 = vld [vmem:[#allocation4 + $0x20] sm:$0xff]  ;;  %v90_v25 = vld [vmem:[#allocation4 + $0x98] sm:$0xff]  ;;  %v192_v7 = vlaneseq }
  0x3b   :  { %348 = vmatprep.subr.mxu0 %v98_v8  ;;  %v74_v26 = vld [vmem:[#allocation4 + $0x18] sm:$0xff]  ;;  %v89_v27 = vld [vmem:[#allocation4 + $0x90] sm:$0xff]  ;;  %v88_v29 = vld [vmem:[#allocation4 + $0x88] sm:$0xff] }
  0x3c   :  { %349 = vmatpush3.msra.mxu0 %v82_v9  ;;  %v73_v28 = vld [vmem:[#allocation4 + $0x10] sm:$0xff]  ;;  %v72_v30 = vld [vmem:[#allocation4 + $0x8] sm:$0xff]  ;;  %v87_v31 = vld [vmem:[#allocation4 + $0x80] sm:$0xff]  ;;  %v193_v8 = vshrl.u32 %v192_v7, 7 }
  0x3d   :  { %350 = vmatprep.subr.mxu0 %v97_v10  ;;  %v71_v32 = vld [vmem:[#allocation4] sm:$0xff]  ;;  %v69_v33 = vld [vmem:[#allocation2] sm:$0xff]  ;;  %v218_v35 = vld [vmem:[#allocation6 + $0x78] sm:$0xff] }
  0x3e   :  { %351 = vmatpush3.msra.mxu0 %v81_v11  ;;  %393 = vmatpush3.msra.mxu1 %v218_v35  ;;  %v217_v36 = vld [vmem:[#allocation6 + $0x70] sm:$0xff]  ;;  %v216_v37 = vld [vmem:[#allocation6 + $0x68] sm:$0xff]  ;;  %v215_v38 = vld [vmem:[#allocation6 + $0x60] sm:$0xff]  ;;  %v194_v10 = vsub.s32 0, %v193_v8  ;;  %v199_v11 = vsub.s32 1, %v193_v8 }
  0x3f   :  { %352 = vmatprep.subr.mxu0 %v96_v12  ;;  %394 = vmatprep.subr.mxu1 %v531_v34  ;;  %v214_v39 = vld [vmem:[#allocation6 + $0x58] sm:$0xff]  ;;  %v213_v40 = vld [vmem:[#allocation6 + $0x50] sm:$0xff]  ;;  %v212_v41 = vld [vmem:[#allocation6 + $0x48] sm:$0xff] }
  0x40   :  { %353 = vmatpush3.msra.mxu0 %v80_v14  ;;  %395 = vmatpush3.msra.mxu1 %v217_v36  ;;  %v211_v42 = vld [vmem:[#allocation6 + $0x40] sm:$0xff]  ;;  %v210_v43 = vld [vmem:[#allocation6 + $0x38] sm:$0xff]  ;;  %v209_v44 = vld [vmem:[#allocation6 + $0x30] sm:$0xff] }
  0x41   :  { %354 = vmatprep.subr.mxu0 %v95_v15  ;;  %396 = vmatprep.subr.mxu1 %v531_v34  ;;  %v208_v45 = vld [vmem:[#allocation6 + $0x28] sm:$0xff]  ;;  %v207_v46 = vld [vmem:[#allocation6 + $0x20] sm:$0xff]  ;;  %v206_v47 = vld [vmem:[#allocation6 + $0x18] sm:$0xff] }
  0x42   :  { %355 = vmatpush3.msra.mxu0 %v79_v16  ;;  %397 = vmatpush3.msra.mxu1 %v216_v37  ;;  %v205_v48 = vld [vmem:[#allocation6 + $0x10] sm:$0xff]  ;;  %v204_v49 = vld [vmem:[#allocation6 + $0x8] sm:$0xff]  ;;  %v203_v50 = vld [vmem:[#allocation6] sm:$0xff] }
  0x43   :  { %356 = vmatprep.subr.mxu0 %v94_v17  ;;  %398 = vmatprep.subr.mxu1 %v531_v34  ;;  %v68_v9 = vld [vmem:[#allocation7] sm:$0xff] }
  0x44   :  { %357 = vmatpush3.msra.mxu0 %v78_v18  ;;  %399 = vmatpush3.msra.mxu1 %v215_v38  ;;  %v200_v15 = vrot.slane %v68_v9, %v199_v11  ;;  %v310_v38 = vsub.s32 2, %v193_v8 }
  0x45   :  { %358 = vmatprep.subr.mxu0 %v93_v19  ;;  %400 = vmatprep.subr.mxu1 %v531_v34 }
  0x46   :  { %359 = vmatpush3.msra.mxu0 %v77_v20  ;;  %401 = vmatpush3.msra.mxu1 %v214_v39  ;;  %v315_v39 = vsub.s32 3, %v193_v8 }
  0x47   :  { %360 = vmatprep.subr.mxu0 %v92_v21  ;;  %402 = vmatprep.subr.mxu1 %v531_v34 }
  0x48   :  { %361 = vmatpush3.msra.mxu0 %v76_v22  ;;  %403 = vmatpush3.msra.mxu1 %v213_v40 }
  0x49   :  { %362 = vmatprep.subr.mxu0 %v91_v23  ;;  %404 = vmatprep.subr.mxu1 %v531_v34 }
  0x4a   :  { %363 = vmatpush3.msra.mxu0 %v75_v24  ;;  %405 = vmatpush3.msra.mxu1 %v212_v41 }
  0x4b   :  { %364 = vmatprep.subr.mxu0 %v90_v25  ;;  %406 = vmatprep.subr.mxu1 %v531_v34 }
  0x4c   :  { %365 = vmatpush3.msra.mxu0 %v74_v26  ;;  %407 = vmatpush3.msra.mxu1 %v211_v42 }
  0x4d   :  { %366 = vmatprep.subr.mxu0 %v89_v27  ;;  %408 = vmatprep.subr.mxu1 %v531_v34 }
  0x4e   :  { %367 = vmatpush3.msra.mxu0 %v73_v28  ;;  %409 = vmatpush3.msra.mxu1 %v210_v43  ;;  %v316_v43 = vrot.slane %v68_v9, %v315_v39 }
  0x4f   :  { %368 = vmatprep.subr.mxu0 %v88_v29  ;;  %410 = vmatprep.subr.mxu1 %v531_v34 }
  0x50   :  { %369 = vmatpush3.msra.mxu0 %v72_v30  ;;  %411 = vmatpush3.msra.mxu1 %v209_v44  ;;  %v321_v44 = vsub.s32 4, %v193_v8 }
  0x51   :  { %370 = vmatprep.subr.mxu0 %v87_v31  ;;  %412 = vmatprep.subr.mxu1 %v531_v34 }
  0x52   :  { %371 = vmatpush3.msra.mxu0 %v71_v32  ;;  %413 = vmatpush3.msra.mxu1 %v208_v45 }
  0x53   :  { %168 = vmatmul.mubr.f32.vlgmr.msra.gmra.mxu0 %v69_v33  ;;  %414 = vmatprep.subr.mxu1 %v531_v34 }
  0x54   :  { %415 = vmatpush3.msra.mxu1 %v207_v46 }
  0x55   :  { %416 = vmatprep.subr.mxu1 %v531_v34 }
  0x56   :  { %417 = vmatpush3.msra.mxu1 %v206_v47  ;;  %v322_v47 = vrot.slane %v68_v9, %v321_v44 }
  0x57   :  { %418 = vmatprep.subr.mxu1 %v531_v34 }
  0x58   :  { %419 = vmatpush3.msra.mxu1 %v205_v48 }
  0x59   :  { %420 = vmatprep.subr.mxu1 %v531_v34 }
  0x5a   :  { %421 = vmatpush3.msra.mxu1 %v204_v49 }
  0x5b   :  { %422 = vmatprep.subr.mxu1 %v531_v34 }
  0x5c   :  { %423 = vmatpush3.msra.mxu1 %v203_v50  ;;  %v328_v50 = vsub.s32 5, %v193_v8 }
 0x113   :  { %v372_v51 = vpop.f32.mrf.mxu0 }
 0x115   :  { %v373_v52 = vpop.f32.mrf.mxu0 }
 0x116   :  { %v374_v53 = vadd.f32 %v373_v52, %v372_v51  ;;  %v329_v51 = vrot.slane %v68_v9, %v328_v50 }
 0x118   :  { %v173_v54 = vrot.slane %v374_v53, 4 }
 0x11a   :  { %v174_v55 = vadd.f32 %v374_v53, %v173_v54 }
 0x11c   :  { %v175_v56 = vrot.slane %v174_v55, 2 }
 0x11e   :  { %v176_v57 = vadd.f32 %v175_v56, %v174_v55 }
 0x120   :  { %v177_v58 = vrot.slane %v176_v57, 1 }
 0x122   :  { %v178_v59 = vadd.f32 %v177_v58, %v176_v57 }
 0x124   :  { %v179_v60 = vmul.f32 0.125, %v178_v59 }
 0x126   :  { %v180_v61 = vsub.f32 %v374_v53, %v179_v60 }
 0x128   :  { %v181_v62 = vmul.f32 %v180_v61, %v180_v61 }
 0x12a   :  { %v182_v63 = vrot.slane %v181_v62, 4 }
 0x12c   :  { %v183_v0 = vadd.f32 %v182_v63, %v181_v62 }
 0x12e   :  { %v184_v1 = vrot.slane %v183_v0, 2 }
 0x130   :  { %v185_v2 = vadd.f32 %v184_v1, %v183_v0 }
 0x132   :  { %v186_v3 = vrot.slane %v185_v2, 1 }
 0x134   :  { %v187_v4 = vadd.f32 %v186_v3, %v185_v2 }
 0x136   :  { %v188_v5 = vmul.f32 0.125, %v187_v4 }
 0x138   :  { %v189_v6 = vadd.f32 1e-05, %v188_v5 }
 0x13a   :  { %435 = vrsqrt.f32 %v189_v6 }
 0x147   :  { %v436_v12 = vpop.eup %435 }
 0x148   :  { %v191_v13 = vmul.f32 %v436_v12, %v68_v9 }
 0x14a   :  { %v195_v14 = vrot.slane %v191_v13, %v194_v10 }
 0x14c   :  { %v196_v16 = vmul.f32 %v195_v14, %v180_v61 }
 0x14e   :  { %v201_v17 = vadd.f32 %v200_v15, %v196_v16 }
 0x150   :  { %v202_v18 = vmax.f32 %v201_v17, 0.0 }
 0x152   :  { %425 = vmatmul.mubr.f32.vlgmr.msra.gmra.mxu1 %v202_v18 }
 0x212   :  { %v285_v19 = vpop.f32.mrf.mxu1 }
 0x213   :  { %v289_v20 = vrot.slane %v285_v19, 4 }
 0x214   :  { %v426_v21 = vpop.f32.mrf.mxu1 }
 0x215   :  { %v290_v22 = vadd.f32 %v289_v20, %v285_v19 }
 0x217   :  { %v291_v23 = vrot.slane %v290_v22, 2 }
 0x219   :  { %v292_v24 = vadd.f32 %v291_v23, %v290_v22 }
 0x21b   :  { %v293_v25 = vrot.slane %v292_v24, 1 }
 0x21d   :  { %v294_v26 = vadd.f32 %v293_v25, %v292_v24 }
 0x21f   :  { %v295_v27 = vmul.f32 0.125, %v294_v26 }
 0x221   :  { %v296_v28 = vsub.f32 %v285_v19, %v295_v27 }
 0x223   :  { %v297_v29 = vmul.f32 %v296_v28, %v296_v28 }
 0x225   :  { %v298_v30 = vrot.slane %v297_v29, 4 }
 0x227   :  { %v299_v31 = vadd.f32 %v298_v30, %v297_v29 }
 0x229   :  { %v300_v32 = vrot.slane %v299_v31, 2 }
 0x22b   :  { %v301_v33 = vadd.f32 %v300_v32, %v299_v31 }
 0x22d   :  { %v302_v34 = vrot.slane %v301_v33, 1 }
 0x22f   :  { %v303_v35 = vadd.f32 %v302_v34, %v301_v33 }
 0x231   :  { %v304_v36 = vmul.f32 0.125, %v303_v35 }
 0x233   :  { %v305_v37 = vadd.f32 1e-05, %v304_v36 }
 0x235   :  { %437 = vrsqrt.f32 %v305_v37 }
 0x242   :  { %v438_v40 = vpop.eup %437 }
 0x243   :  { %v307_v41 = vmul.f32 %v438_v40, %v68_v9 }
 0x245   :  { %v311_v42 = vrot.slane %v307_v41, %v310_v38 }
 0x247   :  { %v312_v45 = vmul.f32 %v311_v42, %v296_v28 }
 0x249   :  { %v317_v46 = vadd.f32 %v316_v43, %v312_v45 }
 0x24b   :  { %v318_v48 = vmax.f32 %v317_v46, 0.0 }
 0x24d   :  { %v323_v49 = vmul.f32 %v322_v47, %v318_v48 }
 0x24f   :  { %324 = vadd.xlane.f32.xlu0 %v323_v49 }
 0x2d8   :  { %v325_v52 = vpop.xlane.xlu0 %324 }
 0x2d9   :  { %v330_v53 = vadd.f32 %v329_v51, %v325_v52 }
 0x2db   :  { %332 = vst.msk [vmem:[%s577_s4] sm:$0xff] %vm331_vm1, %v330_v53 }
 0x2dc   :  { %337 = vsyncpa [#allocation3], 1 }
 0x2dd   :  { %338 = vsyncpa [#allocation5], 1 }
 0x2de   :  { %339 = vsyncpa [#allocation8], 1 }

</bundles_post_ra>
